<compile_context>
chip_gen: v6e
topology: v6e:2x2x1
jax: 0.10.0
libtpu: 0.0.40
codegen_flags: <defaults>
</compile_context>

<pallas_src>
import jax
import jax.numpy as jnp
from jax.experimental import pallas as pl
from jax.experimental.pallas import tpu as pltpu

HIDDEN_SIZE = 2
INPUT_SIZE = 5
NUM_CLASSES = 1
NUM_LAYERS = 1   # forward assumes 1 layer (hn.view(-1, H) == final h)


def lstm_fc_kernel(x_ref, wih_ref, whh_ref, b_ref, w1_ref, b1_ref, w2_ref, b2_ref,
                   out_ref):
    # Everything is VMEM-resident (shapes are tiny; gridless, no streaming).
    TB, I = x_ref.shape            # x_ref: (T*B, I) time-major rows [t0b0, t0b1, t1b0, ...]
    B = out_ref.shape[0]
    T = TB // B
    H = whh_ref.shape[0]           # whh_ref: (H, 4H)
    G = 4 * H

    x2d = x_ref[...]               # (T*B, I)
    whh_t = whh_ref[...]           # (H, 4H)
    b = b_ref[...]                 # (1, 4H)   (b_ih + b_hh fused in wrapper)

    # ---- Hoisted input projection: one matmul, independent of the recurrence.
    xw = jnp.dot(x2d, wih_ref[...], preferred_element_type=jnp.float32) + b   # (T*B, 4H)

    # Lane mask picking the g-gate columns [2H, 3H) — hoisted out of the loop.
    lane = jax.lax.broadcasted_iota(jnp.int32, (B, G), 1)
    g_mask = jnp.logical_and(lane >= 2 * H, lane < 3 * H)

    h = jnp.zeros((B, H), jnp.float32)
    c = jnp.zeros((B, H), jnp.float32)

    # ---- Recurrence: fully unrolled at trace time (T static & small).
    for t in range(T):
        # h @ W_hh as H broadcast FMAs on the VPU (no per-step MXU push/pop).
        rec = h[:, 0:1] * whh_t[0:1, :]
        for k in range(1, H):
            rec = rec + h[:, k:k + 1] * whh_t[k:k + 1, :]
        gates = xw[t * B:(t + 1) * B, :] + rec                        # (B, 4H)

        # Two full-width EUP ops + one VPU select instead of four narrow
        # lane-sliced activations.
        sig = jax.nn.sigmoid(gates)
        th = jnp.tanh(gates)
        act = jnp.where(g_mask, th, sig)

        i_g = act[:, 0 * H:1 * H]
        f_g = act[:, 1 * H:2 * H]
        g_g = act[:, 2 * H:3 * H]
        o_g = act[:, 3 * H:4 * H]
        c = f_g * c + i_g * g_g
        h = o_g * jnp.tanh(c)

    # ---- Head: relu -> fc_1 (K=H=2 -> VPU FMAs) -> relu -> fc.
    hr = jnp.maximum(h, 0.0)                                          # (B, H)
    w1 = w1_ref[...]                                                  # (H, 128)
    hid = hr[:, 0:1] * w1[0:1, :]
    for k in range(1, H):
        hid = hid + hr[:, k:k + 1] * w1[k:k + 1, :]
    hid = jnp.maximum(hid + b1_ref[...], 0.0)                         # (B, 128)

    # Final projection (128 -> num_classes). NUM_CLASSES=1, so the sub-128-lane
    # output store is negligible here; pad the last dim to 128 if C ever grows.
    out = jnp.dot(hid, w2_ref[...], preferred_element_type=jnp.float32) + b2_ref[...]
    out_ref[...] = out                                                # (B, num_classes)


def lstm_forward(x, params):
    """x: (B, T, I) float32, batch-first (PyTorch nn.LSTM(batch_first=True))."""
    B, T, I = x.shape
    H = HIDDEN_SIZE

    # Layout plumbing in the wrapper (free glue): time-major 2-D slab so the
    # kernel does a single (T*B, I) @ (I, 4H) projection and only ever slices
    # the leading (sublane) axis per timestep.
    x_tm = jnp.transpose(x, (1, 0, 2)).reshape(T * B, I)

    # Pre-transpose / fuse parameters so in-kernel matmuls are plain (B,K)@(K,N).
    wih_t = params["weight_ih_l0"].T                       # (I, 4H)
    whh_t = params["weight_hh_l0"].T                       # (H, 4H)
    b = (params["bias_ih_l0"] + params["bias_hh_l0"]).reshape(1, 4 * H)
    w1_t = params["fc1_w"].T                               # (H, 128)
    b1 = params["fc1_b"].reshape(1, -1)                    # (1, 128)
    w2_t = params["fc_w"].T                                # (128, num_classes)
    b2 = params["fc_b"].reshape(1, -1)                     # (1, num_classes)

    vmem = lambda: pl.BlockSpec(memory_space=pltpu.MemorySpace.VMEM)
    # Note: gridless on purpose at this toy size. If B/T scale, add a batch grid
    # with dimension_semantics=("parallel",) (megacore on v7x) and tile x along T.
    return pl.pallas_call(
        lstm_fc_kernel,
        out_shape=jax.ShapeDtypeStruct((B, NUM_CLASSES), jnp.float32),
        in_specs=[vmem() for _ in range(8)],
        out_specs=vmem(),
    )(x_tm, wih_t, whh_t, b, w1_t, b1, w2_t, b2)


def make_params(key):
    """Deterministic synthetic parameters, PyTorch shapes & default-init scale."""
    H, I, C = HIDDEN_SIZE, INPUT_SIZE, NUM_CLASSES
    ks = jax.random.split(key, 8)
    s_lstm = 1.0 / jnp.sqrt(H)
    s_fc1 = 1.0 / jnp.sqrt(H)
    s_fc = 1.0 / jnp.sqrt(128)
    u = lambda k, shape, s: jax.random.uniform(k, shape, jnp.float32, -s, s)
    return {
        "weight_ih_l0": u(ks[0], (4 * H, I), s_lstm),
        "weight_hh_l0": u(ks[1], (4 * H, H), s_lstm),
        "bias_ih_l0": u(ks[2], (4 * H,), s_lstm),
        "bias_hh_l0": u(ks[3], (4 * H,), s_lstm),
        "fc1_w": u(ks[4], (128, H), s_fc1),
        "fc1_b": u(ks[5], (128,), s_fc1),
        "fc_w": u(ks[6], (C, 128), s_fc),
        "fc_b": u(ks[7], (C,), s_fc),
    }


def reference_forward(x, p):
    """Pure-JAX reference mirroring the PyTorch forward (for sanity check)."""
    B, T, I = x.shape
    H = HIDDEN_SIZE
    wih, whh = p["weight_ih_l0"], p["weight_hh_l0"]
    b = p["bias_ih_l0"] + p["bias_hh_l0"]
    h = jnp.zeros((B, H), jnp.float32)
    c = jnp.zeros((B, H), jnp.float32)
    for t in range(T):
        gates = x[:, t, :] @ wih.T + h @ whh.T + b
        i_g = jax.nn.sigmoid(gates[:, 0 * H:1 * H])
        f_g = jax.nn.sigmoid(gates[:, 1 * H:2 * H])
        g_g = jnp.tanh(gates[:, 2 * H:3 * H])
        o_g = jax.nn.sigmoid(gates[:, 3 * H:4 * H])
        c = f_g * c + i_g * g_g
        h = o_g * jnp.tanh(c)
    out = jnp.maximum(h, 0.0)
    out = jnp.maximum(out @ p["fc1_w"].T + p["fc1_b"], 0.0)
    return out @ p["fc_w"].T + p["fc_b"]


if __name__ == "__main__":
    key = jax.random.PRNGKey(0)
    k_param, k_x = jax.random.split(key)

    B, T = 2, 8
    x = jax.random.normal(k_x, (B, T, INPUT_SIZE), jnp.float32)
    params = make_params(k_param)

    out = lstm_forward(x, params)
    out = jax.block_until_ready(out)

    ref = reference_forward(x, params)
    assert out.shape == (B, NUM_CLASSES)
    assert jnp.allclose(out, ref, atol=1e-5, rtol=1e-5), (out, ref)

    print("KERNEL_OK")
</pallas_src>

<mosaic_0001>
module attributes {stable_mosaic.version = 11 : i64} {
  func.func @lstm_fc_kernel(%arg0: memref<16x5xf32, #tpu.memory_space<vmem>>, %arg1: memref<5x8xf32, #tpu.memory_space<vmem>>, %arg2: memref<2x8xf32, #tpu.memory_space<vmem>>, %arg3: memref<1x8xf32, #tpu.memory_space<vmem>>, %arg4: memref<2x128xf32, #tpu.memory_space<vmem>>, %arg5: memref<1x128xf32, #tpu.memory_space<vmem>>, %arg6: memref<128x1xf32, #tpu.memory_space<vmem>>, %arg7: memref<1x1xf32, #tpu.memory_space<vmem>>, %arg8: memref<2x1xf32, #tpu.memory_space<vmem>>) attributes {dimension_semantics = [], scalar_prefetch = 0 : i64, scratch_operands = 0 : i64, tpu.core_type = #tpu.core_type<tc>} {
    %c0 = arith.constant 0 : index
    %c0_0 = arith.constant 0 : index
    %0 = vector.load %arg0[%c0, %c0_0] : memref<16x5xf32, #tpu.memory_space<vmem>>, vector<16x5xf32>
    %c0_1 = arith.constant 0 : index
    %c0_2 = arith.constant 0 : index
    %1 = vector.load %arg2[%c0_1, %c0_2] : memref<2x8xf32, #tpu.memory_space<vmem>>, vector<2x8xf32>
    %c0_3 = arith.constant 0 : index
    %c0_4 = arith.constant 0 : index
    %2 = vector.load %arg3[%c0_3, %c0_4] : memref<1x8xf32, #tpu.memory_space<vmem>>, vector<1x8xf32>
    %c0_5 = arith.constant 0 : index
    %c0_6 = arith.constant 0 : index
    %3 = vector.load %arg1[%c0_5, %c0_6] : memref<5x8xf32, #tpu.memory_space<vmem>>, vector<5x8xf32>
    %cst = arith.constant dense<0.000000e+00> : vector<16x8xf32>
    %4 = tpu.matmul %0, %3, %cst {dimension_numbers = #tpu.dot_dimension_numbers<[1], [0], [0], [1], [0, 0, 1, 1], [], []>} : vector<16x5xf32>, vector<5x8xf32>, vector<16x8xf32> -> vector<16x8xf32>
    %5 = vector.broadcast %2 : vector<1x8xf32> to vector<16x8xf32>
    %6 = arith.addf %4, %5 : vector<16x8xf32>
    %7 = tpu.iota {dimensions = array<i32: 1>} : vector<2x8xi32>
    %c4_i32 = arith.constant 4 : i32
    %8 = vector.broadcast %c4_i32 : i32 to vector<2x8xi32>
    %9 = arith.cmpi sge, %7, %8 : vector<2x8xi32>
    %c6_i32 = arith.constant 6 : i32
    %10 = vector.broadcast %c6_i32 : i32 to vector<2x8xi32>
    %11 = arith.cmpi slt, %7, %10 : vector<2x8xi32>
    %12 = arith.andi %9, %11 : vector<2x8xi1>
    %cst_7 = arith.constant 0.000000e+00 : f32
    %13 = vector.broadcast %cst_7 : f32 to vector<2x2xf32>
    %cst_8 = arith.constant 0.000000e+00 : f32
    %14 = vector.broadcast %cst_8 : f32 to vector<2x2xf32>
    %15 = vector.extract_strided_slice %13 {offsets = [0, 0], sizes = [2, 1], strides = [1, 1]} : vector<2x2xf32> to vector<2x1xf32>
    %16 = vector.extract_strided_slice %1 {offsets = [0, 0], sizes = [1, 8], strides = [1, 1]} : vector<2x8xf32> to vector<1x8xf32>
    %17 = vector.broadcast %15 : vector<2x1xf32> to vector<2x8xf32>
    %18 = vector.broadcast %16 : vector<1x8xf32> to vector<2x8xf32>
    %19 = arith.mulf %17, %18 : vector<2x8xf32>
    %20 = vector.extract_strided_slice %13 {offsets = [0, 1], sizes = [2, 1], strides = [1, 1]} : vector<2x2xf32> to vector<2x1xf32>
    %21 = vector.extract_strided_slice %1 {offsets = [1, 0], sizes = [1, 8], strides = [1, 1]} : vector<2x8xf32> to vector<1x8xf32>
    %22 = vector.broadcast %20 : vector<2x1xf32> to vector<2x8xf32>
    %23 = vector.broadcast %21 : vector<1x8xf32> to vector<2x8xf32>
    %24 = arith.mulf %22, %23 : vector<2x8xf32>
    %25 = arith.addf %19, %24 : vector<2x8xf32>
    %26 = vector.extract_strided_slice %6 {offsets = [0, 0], sizes = [2, 8], strides = [1, 1]} : vector<16x8xf32> to vector<2x8xf32>
    %27 = arith.addf %26, %25 : vector<2x8xf32>
    %28 = arith.negf %27 : vector<2x8xf32>
    %29 = math.exp %28 : vector<2x8xf32>
    %cst_9 = arith.constant 1.000000e+00 : f32
    %30 = vector.broadcast %cst_9 : f32 to vector<2x8xf32>
    %31 = arith.addf %30, %29 : vector<2x8xf32>
    %32 = arith.divf %30, %31 : vector<2x8xf32>
    %33 = math.tanh %27 : vector<2x8xf32>
    %34 = arith.select %12, %33, %32 : vector<2x8xi1>, vector<2x8xf32>
    %35 = vector.extract_strided_slice %34 {offsets = [0, 0], sizes = [2, 2], strides = [1, 1]} : vector<2x8xf32> to vector<2x2xf32>
    %36 = vector.extract_strided_slice %34 {offsets = [0, 2], sizes = [2, 2], strides = [1, 1]} : vector<2x8xf32> to vector<2x2xf32>
    %37 = vector.extract_strided_slice %34 {offsets = [0, 4], sizes = [2, 2], strides = [1, 1]} : vector<2x8xf32> to vector<2x2xf32>
    %38 = vector.extract_strided_slice %34 {offsets = [0, 6], sizes = [2, 2], strides = [1, 1]} : vector<2x8xf32> to vector<2x2xf32>
    %39 = arith.mulf %36, %14 : vector<2x2xf32>
    %40 = arith.mulf %35, %37 : vector<2x2xf32>
    %41 = arith.addf %39, %40 : vector<2x2xf32>
    %42 = math.tanh %41 : vector<2x2xf32>
    %43 = arith.mulf %38, %42 : vector<2x2xf32>
    %44 = vector.extract_strided_slice %43 {offsets = [0, 0], sizes = [2, 1], strides = [1, 1]} : vector<2x2xf32> to vector<2x1xf32>
    %45 = vector.extract_strided_slice %1 {offsets = [0, 0], sizes = [1, 8], strides = [1, 1]} : vector<2x8xf32> to vector<1x8xf32>
    %46 = vector.broadcast %44 : vector<2x1xf32> to vector<2x8xf32>
    %47 = vector.broadcast %45 : vector<1x8xf32> to vector<2x8xf32>
    %48 = arith.mulf %46, %47 : vector<2x8xf32>
    %49 = vector.extract_strided_slice %43 {offsets = [0, 1], sizes = [2, 1], strides = [1, 1]} : vector<2x2xf32> to vector<2x1xf32>
    %50 = vector.extract_strided_slice %1 {offsets = [1, 0], sizes = [1, 8], strides = [1, 1]} : vector<2x8xf32> to vector<1x8xf32>
    %51 = vector.broadcast %49 : vector<2x1xf32> to vector<2x8xf32>
    %52 = vector.broadcast %50 : vector<1x8xf32> to vector<2x8xf32>
    %53 = arith.mulf %51, %52 : vector<2x8xf32>
    %54 = arith.addf %48, %53 : vector<2x8xf32>
    %55 = vector.extract_strided_slice %6 {offsets = [2, 0], sizes = [2, 8], strides = [1, 1]} : vector<16x8xf32> to vector<2x8xf32>
    %56 = arith.addf %55, %54 : vector<2x8xf32>
    %57 = arith.negf %56 : vector<2x8xf32>
    %58 = math.exp %57 : vector<2x8xf32>
    %cst_10 = arith.constant 1.000000e+00 : f32
    %59 = vector.broadcast %cst_10 : f32 to vector<2x8xf32>
    %60 = arith.addf %59, %58 : vector<2x8xf32>
    %61 = arith.divf %59, %60 : vector<2x8xf32>
    %62 = math.tanh %56 : vector<2x8xf32>
    %63 = arith.select %12, %62, %61 : vector<2x8xi1>, vector<2x8xf32>
    %64 = vector.extract_strided_slice %63 {offsets = [0, 0], sizes = [2, 2], strides = [1, 1]} : vector<2x8xf32> to vector<2x2xf32>
    %65 = vector.extract_strided_slice %63 {offsets = [0, 2], sizes = [2, 2], strides = [1, 1]} : vector<2x8xf32> to vector<2x2xf32>
    %66 = vector.extract_strided_slice %63 {offsets = [0, 4], sizes = [2, 2], strides = [1, 1]} : vector<2x8xf32> to vector<2x2xf32>
    %67 = vector.extract_strided_slice %63 {offsets = [0, 6], sizes = [2, 2], strides = [1, 1]} : vector<2x8xf32> to vector<2x2xf32>
    %68 = arith.mulf %65, %41 : vector<2x2xf32>
    %69 = arith.mulf %64, %66 : vector<2x2xf32>
    %70 = arith.addf %68, %69 : vector<2x2xf32>
    %71 = math.tanh %70 : vector<2x2xf32>
    %72 = arith.mulf %67, %71 : vector<2x2xf32>
    %73 = vector.extract_strided_slice %72 {offsets = [0, 0], sizes = [2, 1], strides = [1, 1]} : vector<2x2xf32> to vector<2x1xf32>
    %74 = vector.extract_strided_slice %1 {offsets = [0, 0], sizes = [1, 8], strides = [1, 1]} : vector<2x8xf32> to vector<1x8xf32>
    %75 = vector.broadcast %73 : vector<2x1xf32> to vector<2x8xf32>
    %76 = vector.broadcast %74 : vector<1x8xf32> to vector<2x8xf32>
    %77 = arith.mulf %75, %76 : vector<2x8xf32>
    %78 = vector.extract_strided_slice %72 {offsets = [0, 1], sizes = [2, 1], strides = [1, 1]} : vector<2x2xf32> to vector<2x1xf32>
    %79 = vector.extract_strided_slice %1 {offsets = [1, 0], sizes = [1, 8], strides = [1, 1]} : vector<2x8xf32> to vector<1x8xf32>
    %80 = vector.broadcast %78 : vector<2x1xf32> to vector<2x8xf32>
    %81 = vector.broadcast %79 : vector<1x8xf32> to vector<2x8xf32>
    %82 = arith.mulf %80, %81 : vector<2x8xf32>
    %83 = arith.addf %77, %82 : vector<2x8xf32>
    %84 = vector.extract_strided_slice %6 {offsets = [4, 0], sizes = [2, 8], strides = [1, 1]} : vector<16x8xf32> to vector<2x8xf32>
    %85 = arith.addf %84, %83 : vector<2x8xf32>
    %86 = arith.negf %85 : vector<2x8xf32>
    %87 = math.exp %86 : vector<2x8xf32>
    %cst_11 = arith.constant 1.000000e+00 : f32
    %88 = vector.broadcast %cst_11 : f32 to vector<2x8xf32>
    %89 = arith.addf %88, %87 : vector<2x8xf32>
    %90 = arith.divf %88, %89 : vector<2x8xf32>
    %91 = math.tanh %85 : vector<2x8xf32>
    %92 = arith.select %12, %91, %90 : vector<2x8xi1>, vector<2x8xf32>
    %93 = vector.extract_strided_slice %92 {offsets = [0, 0], sizes = [2, 2], strides = [1, 1]} : vector<2x8xf32> to vector<2x2xf32>
    %94 = vector.extract_strided_slice %92 {offsets = [0, 2], sizes = [2, 2], strides = [1, 1]} : vector<2x8xf32> to vector<2x2xf32>
    %95 = vector.extract_strided_slice %92 {offsets = [0, 4], sizes = [2, 2], strides = [1, 1]} : vector<2x8xf32> to vector<2x2xf32>
    %96 = vector.extract_strided_slice %92 {offsets = [0, 6], sizes = [2, 2], strides = [1, 1]} : vector<2x8xf32> to vector<2x2xf32>
    %97 = arith.mulf %94, %70 : vector<2x2xf32>
    %98 = arith.mulf %93, %95 : vector<2x2xf32>
    %99 = arith.addf %97, %98 : vector<2x2xf32>
    %100 = math.tanh %99 : vector<2x2xf32>
    %101 = arith.mulf %96, %100 : vector<2x2xf32>
    %102 = vector.extract_strided_slice %101 {offsets = [0, 0], sizes = [2, 1], strides = [1, 1]} : vector<2x2xf32> to vector<2x1xf32>
    %103 = vector.extract_strided_slice %1 {offsets = [0, 0], sizes = [1, 8], strides = [1, 1]} : vector<2x8xf32> to vector<1x8xf32>
    %104 = vector.broadcast %102 : vector<2x1xf32> to vector<2x8xf32>
    %105 = vector.broadcast %103 : vector<1x8xf32> to vector<2x8xf32>
    %106 = arith.mulf %104, %105 : vector<2x8xf32>
    %107 = vector.extract_strided_slice %101 {offsets = [0, 1], sizes = [2, 1], strides = [1, 1]} : vector<2x2xf32> to vector<2x1xf32>
    %108 = vector.extract_strided_slice %1 {offsets = [1, 0], sizes = [1, 8], strides = [1, 1]} : vector<2x8xf32> to vector<1x8xf32>
    %109 = vector.broadcast %107 : vector<2x1xf32> to vector<2x8xf32>
    %110 = vector.broadcast %108 : vector<1x8xf32> to vector<2x8xf32>
    %111 = arith.mulf %109, %110 : vector<2x8xf32>
    %112 = arith.addf %106, %111 : vector<2x8xf32>
    %113 = vector.extract_strided_slice %6 {offsets = [6, 0], sizes = [2, 8], strides = [1, 1]} : vector<16x8xf32> to vector<2x8xf32>
    %114 = arith.addf %113, %112 : vector<2x8xf32>
    %115 = arith.negf %114 : vector<2x8xf32>
    %116 = math.exp %115 : vector<2x8xf32>
    %cst_12 = arith.constant 1.000000e+00 : f32
    %117 = vector.broadcast %cst_12 : f32 to vector<2x8xf32>
    %118 = arith.addf %117, %116 : vector<2x8xf32>
    %119 = arith.divf %117, %118 : vector<2x8xf32>
    %120 = math.tanh %114 : vector<2x8xf32>
    %121 = arith.select %12, %120, %119 : vector<2x8xi1>, vector<2x8xf32>
    %122 = vector.extract_strided_slice %121 {offsets = [0, 0], sizes = [2, 2], strides = [1, 1]} : vector<2x8xf32> to vector<2x2xf32>
    %123 = vector.extract_strided_slice %121 {offsets = [0, 2], sizes = [2, 2], strides = [1, 1]} : vector<2x8xf32> to vector<2x2xf32>
    %124 = vector.extract_strided_slice %121 {offsets = [0, 4], sizes = [2, 2], strides = [1, 1]} : vector<2x8xf32> to vector<2x2xf32>
    %125 = vector.extract_strided_slice %121 {offsets = [0, 6], sizes = [2, 2], strides = [1, 1]} : vector<2x8xf32> to vector<2x2xf32>
    %126 = arith.mulf %123, %99 : vector<2x2xf32>
    %127 = arith.mulf %122, %124 : vector<2x2xf32>
    %128 = arith.addf %126, %127 : vector<2x2xf32>
    %129 = math.tanh %128 : vector<2x2xf32>
    %130 = arith.mulf %125, %129 : vector<2x2xf32>
    %131 = vector.extract_strided_slice %130 {offsets = [0, 0], sizes = [2, 1], strides = [1, 1]} : vector<2x2xf32> to vector<2x1xf32>
    %132 = vector.extract_strided_slice %1 {offsets = [0, 0], sizes = [1, 8], strides = [1, 1]} : vector<2x8xf32> to vector<1x8xf32>
    %133 = vector.broadcast %131 : vector<2x1xf32> to vector<2x8xf32>
    %134 = vector.broadcast %132 : vector<1x8xf32> to vector<2x8xf32>
    %135 = arith.mulf %133, %134 : vector<2x8xf32>
    %136 = vector.extract_strided_slice %130 {offsets = [0, 1], sizes = [2, 1], strides = [1, 1]} : vector<2x2xf32> to vector<2x1xf32>
    %137 = vector.extract_strided_slice %1 {offsets = [1, 0], sizes = [1, 8], strides = [1, 1]} : vector<2x8xf32> to vector<1x8xf32>
    %138 = vector.broadcast %136 : vector<2x1xf32> to vector<2x8xf32>
    %139 = vector.broadcast %137 : vector<1x8xf32> to vector<2x8xf32>
    %140 = arith.mulf %138, %139 : vector<2x8xf32>
    %141 = arith.addf %135, %140 : vector<2x8xf32>
    %142 = vector.extract_strided_slice %6 {offsets = [8, 0], sizes = [2, 8], strides = [1, 1]} : vector<16x8xf32> to vector<2x8xf32>
    %143 = arith.addf %142, %141 : vector<2x8xf32>
    %144 = arith.negf %143 : vector<2x8xf32>
    %145 = math.exp %144 : vector<2x8xf32>
    %cst_13 = arith.constant 1.000000e+00 : f32
    %146 = vector.broadcast %cst_13 : f32 to vector<2x8xf32>
    %147 = arith.addf %146, %145 : vector<2x8xf32>
    %148 = arith.divf %146, %147 : vector<2x8xf32>
    %149 = math.tanh %143 : vector<2x8xf32>
    %150 = arith.select %12, %149, %148 : vector<2x8xi1>, vector<2x8xf32>
    %151 = vector.extract_strided_slice %150 {offsets = [0, 0], sizes = [2, 2], strides = [1, 1]} : vector<2x8xf32> to vector<2x2xf32>
    %152 = vector.extract_strided_slice %150 {offsets = [0, 2], sizes = [2, 2], strides = [1, 1]} : vector<2x8xf32> to vector<2x2xf32>
    %153 = vector.extract_strided_slice %150 {offsets = [0, 4], sizes = [2, 2], strides = [1, 1]} : vector<2x8xf32> to vector<2x2xf32>
    %154 = vector.extract_strided_slice %150 {offsets = [0, 6], sizes = [2, 2], strides = [1, 1]} : vector<2x8xf32> to vector<2x2xf32>
    %155 = arith.mulf %152, %128 : vector<2x2xf32>
    %156 = arith.mulf %151, %153 : vector<2x2xf32>
    %157 = arith.addf %155, %156 : vector<2x2xf32>
    %158 = math.tanh %157 : vector<2x2xf32>
    %159 = arith.mulf %154, %158 : vector<2x2xf32>
    %160 = vector.extract_strided_slice %159 {offsets = [0, 0], sizes = [2, 1], strides = [1, 1]} : vector<2x2xf32> to vector<2x1xf32>
    %161 = vector.extract_strided_slice %1 {offsets = [0, 0], sizes = [1, 8], strides = [1, 1]} : vector<2x8xf32> to vector<1x8xf32>
    %162 = vector.broadcast %160 : vector<2x1xf32> to vector<2x8xf32>
    %163 = vector.broadcast %161 : vector<1x8xf32> to vector<2x8xf32>
    %164 = arith.mulf %162, %163 : vector<2x8xf32>
    %165 = vector.extract_strided_slice %159 {offsets = [0, 1], sizes = [2, 1], strides = [1, 1]} : vector<2x2xf32> to vector<2x1xf32>
    %166 = vector.extract_strided_slice %1 {offsets = [1, 0], sizes = [1, 8], strides = [1, 1]} : vector<2x8xf32> to vector<1x8xf32>
    %167 = vector.broadcast %165 : vector<2x1xf32> to vector<2x8xf32>
    %168 = vector.broadcast %166 : vector<1x8xf32> to vector<2x8xf32>
    %169 = arith.mulf %167, %168 : vector<2x8xf32>
    %170 = arith.addf %164, %169 : vector<2x8xf32>
    %171 = vector.extract_strided_slice %6 {offsets = [10, 0], sizes = [2, 8], strides = [1, 1]} : vector<16x8xf32> to vector<2x8xf32>
    %172 = arith.addf %171, %170 : vector<2x8xf32>
    %173 = arith.negf %172 : vector<2x8xf32>
    %174 = math.exp %173 : vector<2x8xf32>
    %cst_14 = arith.constant 1.000000e+00 : f32
    %175 = vector.broadcast %cst_14 : f32 to vector<2x8xf32>
    %176 = arith.addf %175, %174 : vector<2x8xf32>
    %177 = arith.divf %175, %176 : vector<2x8xf32>
    %178 = math.tanh %172 : vector<2x8xf32>
    %179 = arith.select %12, %178, %177 : vector<2x8xi1>, vector<2x8xf32>
    %180 = vector.extract_strided_slice %179 {offsets = [0, 0], sizes = [2, 2], strides = [1, 1]} : vector<2x8xf32> to vector<2x2xf32>
    %181 = vector.extract_strided_slice %179 {offsets = [0, 2], sizes = [2, 2], strides = [1, 1]} : vector<2x8xf32> to vector<2x2xf32>
    %182 = vector.extract_strided_slice %179 {offsets = [0, 4], sizes = [2, 2], strides = [1, 1]} : vector<2x8xf32> to vector<2x2xf32>
    %183 = vector.extract_strided_slice %179 {offsets = [0, 6], sizes = [2, 2], strides = [1, 1]} : vector<2x8xf32> to vector<2x2xf32>
    %184 = arith.mulf %181, %157 : vector<2x2xf32>
    %185 = arith.mulf %180, %182 : vector<2x2xf32>
    %186 = arith.addf %184, %185 : vector<2x2xf32>
    %187 = math.tanh %186 : vector<2x2xf32>
    %188 = arith.mulf %183, %187 : vector<2x2xf32>
    %189 = vector.extract_strided_slice %188 {offsets = [0, 0], sizes = [2, 1], strides = [1, 1]} : vector<2x2xf32> to vector<2x1xf32>
    %190 = vector.extract_strided_slice %1 {offsets = [0, 0], sizes = [1, 8], strides = [1, 1]} : vector<2x8xf32> to vector<1x8xf32>
    %191 = vector.broadcast %189 : vector<2x1xf32> to vector<2x8xf32>
    %192 = vector.broadcast %190 : vector<1x8xf32> to vector<2x8xf32>
    %193 = arith.mulf %191, %192 : vector<2x8xf32>
    %194 = vector.extract_strided_slice %188 {offsets = [0, 1], sizes = [2, 1], strides = [1, 1]} : vector<2x2xf32> to vector<2x1xf32>
    %195 = vector.extract_strided_slice %1 {offsets = [1, 0], sizes = [1, 8], strides = [1, 1]} : vector<2x8xf32> to vector<1x8xf32>
    %196 = vector.broadcast %194 : vector<2x1xf32> to vector<2x8xf32>
    %197 = vector.broadcast %195 : vector<1x8xf32> to vector<2x8xf32>
    %198 = arith.mulf %196, %197 : vector<2x8xf32>
    %199 = arith.addf %193, %198 : vector<2x8xf32>
    %200 = vector.extract_strided_slice %6 {offsets = [12, 0], sizes = [2, 8], strides = [1, 1]} : vector<16x8xf32> to vector<2x8xf32>
    %201 = arith.addf %200, %199 : vector<2x8xf32>
    %202 = arith.negf %201 : vector<2x8xf32>
    %203 = math.exp %202 : vector<2x8xf32>
    %cst_15 = arith.constant 1.000000e+00 : f32
    %204 = vector.broadcast %cst_15 : f32 to vector<2x8xf32>
    %205 = arith.addf %204, %203 : vector<2x8xf32>
    %206 = arith.divf %204, %205 : vector<2x8xf32>
    %207 = math.tanh %201 : vector<2x8xf32>
    %208 = arith.select %12, %207, %206 : vector<2x8xi1>, vector<2x8xf32>
    %209 = vector.extract_strided_slice %208 {offsets = [0, 0], sizes = [2, 2], strides = [1, 1]} : vector<2x8xf32> to vector<2x2xf32>
    %210 = vector.extract_strided_slice %208 {offsets = [0, 2], sizes = [2, 2], strides = [1, 1]} : vector<2x8xf32> to vector<2x2xf32>
    %211 = vector.extract_strided_slice %208 {offsets = [0, 4], sizes = [2, 2], strides = [1, 1]} : vector<2x8xf32> to vector<2x2xf32>
    %212 = vector.extract_strided_slice %208 {offsets = [0, 6], sizes = [2, 2], strides = [1, 1]} : vector<2x8xf32> to vector<2x2xf32>
    %213 = arith.mulf %210, %186 : vector<2x2xf32>
    %214 = arith.mulf %209, %211 : vector<2x2xf32>
    %215 = arith.addf %213, %214 : vector<2x2xf32>
    %216 = math.tanh %215 : vector<2x2xf32>
    %217 = arith.mulf %212, %216 : vector<2x2xf32>
    %218 = vector.extract_strided_slice %217 {offsets = [0, 0], sizes = [2, 1], strides = [1, 1]} : vector<2x2xf32> to vector<2x1xf32>
    %219 = vector.extract_strided_slice %1 {offsets = [0, 0], sizes = [1, 8], strides = [1, 1]} : vector<2x8xf32> to vector<1x8xf32>
    %220 = vector.broadcast %218 : vector<2x1xf32> to vector<2x8xf32>
    %221 = vector.broadcast %219 : vector<1x8xf32> to vector<2x8xf32>
    %222 = arith.mulf %220, %221 : vector<2x8xf32>
    %223 = vector.extract_strided_slice %217 {offsets = [0, 1], sizes = [2, 1], strides = [1, 1]} : vector<2x2xf32> to vector<2x1xf32>
    %224 = vector.extract_strided_slice %1 {offsets = [1, 0], sizes = [1, 8], strides = [1, 1]} : vector<2x8xf32> to vector<1x8xf32>
    %225 = vector.broadcast %223 : vector<2x1xf32> to vector<2x8xf32>
    %226 = vector.broadcast %224 : vector<1x8xf32> to vector<2x8xf32>
    %227 = arith.mulf %225, %226 : vector<2x8xf32>
    %228 = arith.addf %222, %227 : vector<2x8xf32>
    %229 = vector.extract_strided_slice %6 {offsets = [14, 0], sizes = [2, 8], strides = [1, 1]} : vector<16x8xf32> to vector<2x8xf32>
    %230 = arith.addf %229, %228 : vector<2x8xf32>
    %231 = arith.negf %230 : vector<2x8xf32>
    %232 = math.exp %231 : vector<2x8xf32>
    %cst_16 = arith.constant 1.000000e+00 : f32
    %233 = vector.broadcast %cst_16 : f32 to vector<2x8xf32>
    %234 = arith.addf %233, %232 : vector<2x8xf32>
    %235 = arith.divf %233, %234 : vector<2x8xf32>
    %236 = math.tanh %230 : vector<2x8xf32>
    %237 = arith.select %12, %236, %235 : vector<2x8xi1>, vector<2x8xf32>
    %238 = vector.extract_strided_slice %237 {offsets = [0, 0], sizes = [2, 2], strides = [1, 1]} : vector<2x8xf32> to vector<2x2xf32>
    %239 = vector.extract_strided_slice %237 {offsets = [0, 2], sizes = [2, 2], strides = [1, 1]} : vector<2x8xf32> to vector<2x2xf32>
    %240 = vector.extract_strided_slice %237 {offsets = [0, 4], sizes = [2, 2], strides = [1, 1]} : vector<2x8xf32> to vector<2x2xf32>
    %241 = vector.extract_strided_slice %237 {offsets = [0, 6], sizes = [2, 2], strides = [1, 1]} : vector<2x8xf32> to vector<2x2xf32>
    %242 = arith.mulf %239, %215 : vector<2x2xf32>
    %243 = arith.mulf %238, %240 : vector<2x2xf32>
    %244 = arith.addf %242, %243 : vector<2x2xf32>
    %245 = math.tanh %244 : vector<2x2xf32>
    %246 = arith.mulf %241, %245 : vector<2x2xf32>
    %cst_17 = arith.constant 0.000000e+00 : f32
    %247 = vector.broadcast %cst_17 : f32 to vector<2x2xf32>
    %248 = arith.maximumf %246, %247 : vector<2x2xf32>
    %c0_18 = arith.constant 0 : index
    %c0_19 = arith.constant 0 : index
    %249 = vector.load %arg4[%c0_18, %c0_19] : memref<2x128xf32, #tpu.memory_space<vmem>>, vector<2x128xf32>
    %250 = vector.extract_strided_slice %248 {offsets = [0, 0], sizes = [2, 1], strides = [1, 1]} : vector<2x2xf32> to vector<2x1xf32>
    %251 = vector.extract_strided_slice %249 {offsets = [0, 0], sizes = [1, 128], strides = [1, 1]} : vector<2x128xf32> to vector<1x128xf32>
    %252 = vector.broadcast %250 : vector<2x1xf32> to vector<2x128xf32>
    %253 = vector.broadcast %251 : vector<1x128xf32> to vector<2x128xf32>
    %254 = arith.mulf %252, %253 : vector<2x128xf32>
    %255 = vector.extract_strided_slice %248 {offsets = [0, 1], sizes = [2, 1], strides = [1, 1]} : vector<2x2xf32> to vector<2x1xf32>
    %256 = vector.extract_strided_slice %249 {offsets = [1, 0], sizes = [1, 128], strides = [1, 1]} : vector<2x128xf32> to vector<1x128xf32>
    %257 = vector.broadcast %255 : vector<2x1xf32> to vector<2x128xf32>
    %258 = vector.broadcast %256 : vector<1x128xf32> to vector<2x128xf32>
    %259 = arith.mulf %257, %258 : vector<2x128xf32>
    %260 = arith.addf %254, %259 : vector<2x128xf32>
    %c0_20 = arith.constant 0 : index
    %c0_21 = arith.constant 0 : index
    %261 = vector.load %arg5[%c0_20, %c0_21] : memref<1x128xf32, #tpu.memory_space<vmem>>, vector<1x128xf32>
    %262 = vector.broadcast %261 : vector<1x128xf32> to vector<2x128xf32>
    %263 = arith.addf %260, %262 : vector<2x128xf32>
    %cst_22 = arith.constant 0.000000e+00 : f32
    %264 = vector.broadcast %cst_22 : f32 to vector<2x128xf32>
    %265 = arith.maximumf %263, %264 : vector<2x128xf32>
    %c0_23 = arith.constant 0 : index
    %c0_24 = arith.constant 0 : index
    %266 = vector.load %arg6[%c0_23, %c0_24] : memref<128x1xf32, #tpu.memory_space<vmem>>, vector<128x1xf32>
    %cst_25 = arith.constant dense<0.000000e+00> : vector<2x1xf32>
    %267 = tpu.matmul %265, %266, %cst_25 {dimension_numbers = #tpu.dot_dimension_numbers<[1], [0], [0], [1], [0, 0, 1, 1], [], []>} : vector<2x128xf32>, vector<128x1xf32>, vector<2x1xf32> -> vector<2x1xf32>
    %c0_26 = arith.constant 0 : index
    %c0_27 = arith.constant 0 : index
    %268 = vector.load %arg7[%c0_26, %c0_27] : memref<1x1xf32, #tpu.memory_space<vmem>>, vector<1x1xf32>
    %269 = vector.broadcast %268 : vector<1x1xf32> to vector<2x1xf32>
    %270 = arith.addf %267, %269 : vector<2x1xf32>
    %c0_28 = arith.constant 0 : index
    %c0_29 = arith.constant 0 : index
    %271 = vector.load %arg8[%c0_28, %c0_29] : memref<2x1xf32, #tpu.memory_space<vmem>>, vector<2x1xf32>
    tpu.vector_store %arg8[%c0_28, %c0_29], %270 {strides = array<i32>} : memref<2x1xf32, #tpu.memory_space<vmem>>, vector<2x1xf32>,
    return
  }
}

</mosaic_0001>

<bundles_post_ra>
// kernel: tpu_custom_call.1
= control target key start
LH: loop header
LB: loop body
LE: loop exit
PB: predicated region body
PF: predicated region fallthrough
CT: control target
= control target key end

     0   :  { %vm49_vm0 = vcmask 1044480   ;;  %vm42_vm1 = vcmask 39936   ;;  %v128_v3 = vlaneseq  ;;  %v767_v32 = vmov 7   ;;  %s769_s13 = smov 4   ;;  %s989_s1 = inlined_call_operand.vmem [shape: f32[5,8], index: 1, kind: input, shape index: {}]   ;;  %s990_s0 = inlined_call_operand.vmem [shape: f32[16,5], index: 0, kind: input, shape index: {}]   ;;  %s991_s2 = inlined_call_operand.vmem [shape: f32[2,8], index: 2, kind: input, shape index: {}]   ;;  %s992_s3 = inlined_call_operand.vmem [shape: f32[1,8], index: 3, kind: input, shape index: {}]   ;;  %s993_s6 = inlined_call_operand.vmem [shape: f32[128,1], index: 6, kind: input, shape index: {}]   ;;  %s994_s7 = inlined_call_operand.<no memory space> [shape: f32[1,1], index: 7, kind: input, shape index: {}]   ;;  %s995_s4 = inlined_call_operand.vmem [shape: f32[2,128], index: 4, kind: input, shape index: {}]   ;;  %s996_s5 = inlined_call_operand.vmem [shape: f32[1,128], index: 5, kind: input, shape index: {}]   ;;  %s997_s8 = inlined_call_operand.vmem [shape: f32[2,1], index: 8, kind: output, shape index: {}]  }
   0x1   :  { %v35_v0 = vld [vmem:[%s989_s1] sm:$0x1f]  ;;  %v32_v2 = vld [vmem:[%s990_s0 + $0x8] sm:$0xff]  ;;  %693 = vset.pattern.permute.xlu0 %v767_v32  ;;  %v768_v33 = vmov 6   ;;  %v523_v23 = vld [vmem:[%s993_s6 + $0x70] sm:$0xff]  ;;  %vm771_vm5 = vmmov 0  }
   0x2   :  { %v31_v1 = vld [vmem:[%s990_s0] sm:$0xff]  ;;  %645 = vmatprep.subr.msk.mxu0 %vm49_vm0, %v35_v0  ;;  %v826_v4 = vshrl.u32 %v128_v3, 7  ;;  %v129_v22 = vand.u32 127, %v128_v3  ;;  %692 = vset.pattern.permute.xlu1 %v768_v33  ;;  %vm605_vm6 = vcmask 1024  }
   0x3   :  { %647 = vmatprep.mubr.msk.f32.mxu0 %vm42_vm1, %v31_v1  ;;  %646 = vmatpush3.msk.msra.mxu0 %vm49_vm0, %v35_v0  ;;  %v33_v7 = vld [vmem:[%s991_s2] sm:$0x3]  ;;  %s765_s2 = smov 124  }
   0x4   :  { %648 = vmatmul.mubr.msk.f32.vlgmr.msra.gmra.mxu0 %vm42_vm1, %v32_v2  ;;  %v135_v5 = vsub.s32 0, %v826_v4  ;;  %v140_v6 = vsub.s32 1, %v826_v4  ;;  %v611_v12 = vld [vmem:[%s992_s3] ss:$0 sm:$0xff]  ;;  %vm130_vm2 = vcmp.ge.s32.totalorder %v129_v22, 4  ;;  %vm131_vm3 = vcmp.lt.s32.totalorder %v129_v22, 6 }
   0x5   :  { %vm851_vm4 = vmand %vm130_vm2, %vm131_vm3  ;;  %s766_s3 = smov 2  }
   0x6   :  { %v835_v8 = vrot.slane %v33_v7, %v135_v5  ;;  %v839_v9 = vrot.slane %v33_v7, %v140_v6 }
   0x8   :  { %v137_v10 = vmul.f32 0.0, %v835_v8  ;;  %v142_v11 = vmul.f32 0.0, %v839_v9 }
   0xa   :  { %v143_v15 = vadd.f32 %v142_v11, %v137_v10 }
  0xc4   :  { %v649_v13 = vpop.f32.mrf.mxu0 }
  0xc5   :  { %v846_v14 = vadd.f32 %v649_v13, %v611_v12 }
  0xc6   :  { %v119_v16 = vpop.f32.mrf.mxu0 }
  0xc7   :  { %v848_v17 = vadd.f32 %v611_v12, %v119_v16 }
  0xc9   :  { %v144_v18 = vadd.f32 %v143_v15, %v848_v17 }
  0xcb   :  { %v615_v19 = vmul.f32 -1.442695, %v144_v18 }
  0xcd   :  { %701 = vpow2.f32 %v615_v19 }
  0xce   :  { %703 = vtanh.f32 %v144_v18 }
  0xda   :  { %v702_v20 = vpop.eup %701 }
  0xdb   :  { %v148_v21 = vadd.f32 1.0, %v702_v20  ;;  %v704_v24 = vpop.eup %703 }
  0xdd   :  { %705 = vrcp.f32 %v148_v21 }
  0xea   :  { %v706_v25 = vpop.eup %705 }
  0xeb   :  { %v152_v26 = vsel %vm851_vm4, %v704_v24, %v706_v25 }
  0xec   :  { %155 = vrot.lane.b32.xlu0 %v152_v26, %s765_s2  ;;  %v153_v29 = vmul.f32 0.0, %v152_v26 }
 0x15e   :  { %v156_v27 = vpop.permute.xlu0 %155 }
 0x15f   :  { %v158_v28 = vmul.f32 %v156_v27, %v152_v26 }
 0x161   :  { %160 = vrot.lane.b32.xlu0 %v158_v28, %s766_s3 }
 0x1d3   :  { %v161_v30 = vpop.permute.xlu0 %160 }
 0x1d4   :  { %v163_v31 = vadd.f32 %v161_v30, %v153_v29 }
 0x1d6   :  { %707 = vtanh.f32 %v163_v31  ;;  %v195_v52 = vrot.slane %v163_v31, 6 }
 0x1e3   :  { %v708_v34 = vpop.eup %707 }
 0x1e4   :  { %166 = vrot.lane.b32.xlu1 %v708_v34, %s769_s13 }
 0x256   :  { %v167_v35 = vpop.permute.xlu1 %166 }
 0x257   :  { %v169_v36 = vmul.f32 %v167_v35, %v152_v26 }
 0x259   :  { %177 = vperm.xlu0 %693, %v169_v36   ;;  %172 = vperm.xlu1 %692, %v169_v36  }
 0x2d4   :  { %v178_v37 = vpop.permute.xlu0 %177  ;;  %v173_v38 = vpop.permute.xlu1 %172 }
 0x2d5   :  { %v180_v39 = vmul.f32 %v178_v37, %v839_v9  ;;  %v175_v40 = vmul.f32 %v173_v38, %v835_v8 }
 0x2d7   :  { %v181_v41 = vadd.f32 %v180_v39, %v175_v40 }
 0x2d9   :  { %v183_v42 = vrot.slane %v181_v41, 6 }
 0x2db   :  { %v185_v43 = vadd.f32 %v183_v42, %v848_v17 }
 0x2dd   :  { %v616_v44 = vmul.f32 -1.442695, %v185_v43 }
 0x2df   :  { %709 = vpow2.f32 %v616_v44 }
 0x2e0   :  { %711 = vtanh.f32 %v185_v43 }
 0x2ec   :  { %v710_v45 = vpop.eup %709 }
 0x2ed   :  { %v189_v46 = vadd.f32 1.0, %v710_v45  ;;  %v712_v47 = vpop.eup %711 }
 0x2ef   :  { %713 = vrcp.f32 %v189_v46 }
 0x2fc   :  { %v714_v48 = vpop.eup %713 }
 0x2fd   :  { %v193_v49 = vsel %vm851_vm4, %v712_v47, %v714_v48 }
 0x2fe   :  { %199 = vrot.lane.b32.xlu1 %v193_v49, %s765_s2  ;;  %v197_v53 = vmul.f32 %v195_v52, %v193_v49 }
 0x370   :  { %v200_v50 = vpop.permute.xlu1 %199 }
 0x371   :  { %v202_v51 = vmul.f32 %v200_v50, %v193_v49 }
 0x373   :  { %204 = vrot.lane.b32.xlu1 %v202_v51, %s766_s3 }
 0x3e5   :  { %v205_v54 = vpop.permute.xlu1 %204 }
 0x3e6   :  { %v207_v55 = vadd.f32 %v205_v54, %v197_v53 }
 0x3e8   :  { %715 = vtanh.f32 %v207_v55  ;;  %v239_v16 = vrot.slane %v207_v55, 6 }
 0x3f5   :  { %v716_v56 = vpop.eup %715 }
 0x3f6   :  { %210 = vrot.lane.b32.xlu0 %v716_v56, %s769_s13 }
 0x468   :  { %v211_v57 = vpop.permute.xlu0 %210 }
 0x469   :  { %v213_v58 = vmul.f32 %v211_v57, %v193_v49 }
 0x46b   :  { %221 = vperm.xlu0 %693, %v213_v58   ;;  %216 = vperm.xlu1 %692, %v213_v58  }
 0x46f   :  { %694 = vset.pattern.permute.xlu0 %v768_v33  ;;  %695 = vset.pattern.permute.xlu1 %v767_v32 }
 0x4e6   :  { %v222_v59 = vpop.permute.xlu0 %221  ;;  %v217_v60 = vpop.permute.xlu1 %216 }
 0x4e7   :  { %v224_v61 = vmul.f32 %v222_v59, %v839_v9  ;;  %v219_v62 = vmul.f32 %v217_v60, %v835_v8 }
 0x4e9   :  { %v225_v63 = vadd.f32 %v224_v61, %v219_v62 }
 0x4eb   :  { %v227_v0 = vrot.slane %v225_v63, 6 }
 0x4ed   :  { %v229_v1 = vadd.f32 %v227_v0, %v848_v17 }
 0x4ef   :  { %v617_v2 = vmul.f32 -1.442695, %v229_v1 }
 0x4f1   :  { %717 = vpow2.f32 %v617_v2 }
 0x4f2   :  { %719 = vtanh.f32 %v229_v1 }
 0x4fe   :  { %v718_v3 = vpop.eup %717 }
 0x4ff   :  { %v233_v7 = vadd.f32 1.0, %v718_v3  ;;  %v720_v10 = vpop.eup %719 }
 0x501   :  { %721 = vrcp.f32 %v233_v7 }
 0x50e   :  { %v722_v11 = vpop.eup %721 }
 0x50f   :  { %v237_v12 = vsel %vm851_vm4, %v720_v10, %v722_v11 }
 0x510   :  { %243 = vrot.lane.b32.xlu1 %v237_v12, %s765_s2  ;;  %v241_v18 = vmul.f32 %v239_v16, %v237_v12 }
 0x582   :  { %v244_v13 = vpop.permute.xlu1 %243 }
 0x583   :  { %v246_v15 = vmul.f32 %v244_v13, %v237_v12 }
 0x585   :  { %248 = vrot.lane.b32.xlu0 %v246_v15, %s766_s3 }
 0x5f7   :  { %v249_v19 = vpop.permute.xlu0 %248 }
 0x5f8   :  { %v251_v20 = vadd.f32 %v249_v19, %v241_v18 }
 0x5fa   :  { %723 = vtanh.f32 %v251_v20  ;;  %v283_v42 = vrot.slane %v251_v20, 6 }
 0x607   :  { %v724_v21 = vpop.eup %723 }
 0x608   :  { %254 = vrot.lane.b32.xlu1 %v724_v21, %s769_s13 }
 0x67a   :  { %v255_v22 = vpop.permute.xlu1 %254 }
 0x67b   :  { %v257_v24 = vmul.f32 %v255_v22, %v237_v12 }
 0x67d   :  { %265 = vperm.xlu1 %695, %v257_v24   ;;  %260 = vperm.xlu0 %694, %v257_v24  }
 0x6f8   :  { %v266_v25 = vpop.permute.xlu1 %265  ;;  %v261_v26 = vpop.permute.xlu0 %260 }
 0x6f9   :  { %v268_v27 = vmul.f32 %v266_v25, %v839_v9  ;;  %v263_v28 = vmul.f32 %v261_v26, %v835_v8 }
 0x6fb   :  { %v269_v29 = vadd.f32 %v268_v27, %v263_v28 }
 0x6fd   :  { %v271_v30 = vrot.slane %v269_v29, 6 }
 0x6ff   :  { %v273_v31 = vadd.f32 %v271_v30, %v848_v17 }
 0x701   :  { %v618_v34 = vmul.f32 -1.442695, %v273_v31 }
 0x703   :  { %725 = vpow2.f32 %v618_v34 }
 0x704   :  { %727 = vtanh.f32 %v273_v31 }
 0x710   :  { %v726_v35 = vpop.eup %725 }
 0x711   :  { %v277_v36 = vadd.f32 1.0, %v726_v35  ;;  %v728_v37 = vpop.eup %727 }
 0x713   :  { %729 = vrcp.f32 %v277_v36 }
 0x720   :  { %v730_v38 = vpop.eup %729 }
 0x721   :  { %v281_v39 = vsel %vm851_vm4, %v728_v37, %v730_v38 }
 0x722   :  { %287 = vrot.lane.b32.xlu1 %v281_v39, %s765_s2  ;;  %v285_v43 = vmul.f32 %v283_v42, %v281_v39 }
 0x794   :  { %v288_v40 = vpop.permute.xlu1 %287 }
 0x795   :  { %v290_v41 = vmul.f32 %v288_v40, %v281_v39 }
 0x797   :  { %292 = vrot.lane.b32.xlu0 %v290_v41, %s766_s3 }
 0x809   :  { %v293_v17 = vpop.permute.xlu0 %292 }
 0x80a   :  { %v295_v44 = vadd.f32 %v293_v17, %v285_v43 }
 0x80c   :  { %731 = vtanh.f32 %v295_v44  ;;  %v327_v63 = vrot.slane %v295_v44, 6 }
 0x819   :  { %v732_v45 = vpop.eup %731 }
 0x81a   :  { %298 = vrot.lane.b32.xlu1 %v732_v45, %s769_s13 }
 0x88c   :  { %v299_v46 = vpop.permute.xlu1 %298 }
 0x88d   :  { %v301_v47 = vmul.f32 %v299_v46, %v281_v39 }
 0x88f   :  { %309 = vperm.xlu1 %695, %v301_v47   ;;  %304 = vperm.xlu0 %694, %v301_v47  }
 0x893   :  { %696 = vset.pattern.permute.xlu1 %v768_v33  ;;  %697 = vset.pattern.permute.xlu0 %v767_v32 }
 0x90a   :  { %v310_v48 = vpop.permute.xlu1 %309  ;;  %v305_v49 = vpop.permute.xlu0 %304 }
 0x90b   :  { %v312_v50 = vmul.f32 %v310_v48, %v839_v9  ;;  %v307_v51 = vmul.f32 %v305_v49, %v835_v8 }
 0x90d   :  { %v313_v52 = vadd.f32 %v312_v50, %v307_v51 }
 0x90f   :  { %v315_v53 = vrot.slane %v313_v52, 6 }
 0x911   :  { %v317_v54 = vadd.f32 %v315_v53, %v846_v14 }
 0x913   :  { %v619_v55 = vmul.f32 -1.442695, %v317_v54 }
 0x915   :  { %733 = vpow2.f32 %v619_v55 }
 0x916   :  { %735 = vtanh.f32 %v317_v54 }
 0x922   :  { %v734_v56 = vpop.eup %733 }
 0x923   :  { %v321_v57 = vadd.f32 1.0, %v734_v56  ;;  %v736_v58 = vpop.eup %735 }
 0x925   :  { %737 = vrcp.f32 %v321_v57 }
 0x932   :  { %v738_v59 = vpop.eup %737 }
 0x933   :  { %v325_v60 = vsel %vm851_vm4, %v736_v58, %v738_v59 }
 0x934   :  { %331 = vrot.lane.b32.xlu0 %v325_v60, %s765_s2  ;;  %v329_v0 = vmul.f32 %v327_v63, %v325_v60 }
 0x9a6   :  { %v332_v61 = vpop.permute.xlu0 %331 }
 0x9a7   :  { %v334_v62 = vmul.f32 %v332_v61, %v325_v60 }
 0x9a9   :  { %336 = vrot.lane.b32.xlu1 %v334_v62, %s766_s3 }
 0xa1b   :  { %v337_v1 = vpop.permute.xlu1 %336 }
 0xa1c   :  { %v339_v2 = vadd.f32 %v337_v1, %v329_v0 }
 0xa1e   :  { %739 = vtanh.f32 %v339_v2  ;;  %v371_v29 = vrot.slane %v339_v2, 6 }
 0xa2b   :  { %v740_v3 = vpop.eup %739 }
 0xa2c   :  { %342 = vrot.lane.b32.xlu0 %v740_v3, %s769_s13 }
 0xa9e   :  { %v343_v7 = vpop.permute.xlu0 %342 }
 0xa9f   :  { %v345_v10 = vmul.f32 %v343_v7, %v325_v60 }
 0xaa1   :  { %353 = vperm.xlu0 %697, %v345_v10   ;;  %348 = vperm.xlu1 %696, %v345_v10  }
 0xb1c   :  { %v354_v11 = vpop.permute.xlu0 %353  ;;  %v349_v12 = vpop.permute.xlu1 %348 }
 0xb1d   :  { %v356_v13 = vmul.f32 %v354_v11, %v839_v9  ;;  %v351_v15 = vmul.f32 %v349_v12, %v835_v8 }
 0xb1f   :  { %v357_v16 = vadd.f32 %v356_v13, %v351_v15 }
 0xb21   :  { %v359_v18 = vrot.slane %v357_v16, 6  ;;  %v770_v16 = vmov 0.0  }
 0xb22   :  { %650 = vmatprep.subr.mxu1 %v770_v16  ;;  %682 = vmatprep.mubr.msk.f32.mxu1 %vm771_vm5, %v770_v16 }
 0xb23   :  { %v361_v19 = vadd.f32 %v359_v18, %v846_v14  ;;  %v524_v18 = vld [vmem:[%s993_s6 + $0x78] sm:$0xff] }
 0xb24   :  { %651 = vmatpush3.msra.mxu1 %v524_v18 }
 0xb25   :  { %v620_v20 = vmul.f32 -1.442695, %v361_v19  ;;  %652 = vmatprep.subr.mxu1 %v770_v16 }
 0xb26   :  { %653 = vmatpush3.msra.mxu1 %v523_v23 }
 0xb27   :  { %741 = vpow2.f32 %v620_v20  ;;  %654 = vmatprep.subr.mxu1 %v770_v16  ;;  %v521_v20 = vld [vmem:[%s993_s6 + $0x60] sm:$0xff] }
 0xb28   :  { %743 = vtanh.f32 %v361_v19  ;;  %v522_v19 = vld [vmem:[%s993_s6 + $0x68] sm:$0xff] }
 0xb29   :  { %655 = vmatpush3.msra.mxu1 %v522_v19 }
 0xb2a   :  { %656 = vmatprep.subr.mxu1 %v770_v16 }
 0xb2b   :  { %657 = vmatpush3.msra.mxu1 %v521_v20 }
 0xb2c   :  { %658 = vmatprep.subr.mxu1 %v770_v16 }
 0xb34   :  { %v742_v21 = vpop.eup %741 }
 0xb35   :  { %v365_v22 = vadd.f32 1.0, %v742_v21  ;;  %v744_v24 = vpop.eup %743  ;;  %v520_v21 = vld [vmem:[%s993_s6 + $0x58] sm:$0xff] }
 0xb36   :  { %659 = vmatpush3.msra.mxu1 %v520_v21 }
 0xb37   :  { %745 = vrcp.f32 %v365_v22  ;;  %660 = vmatprep.subr.mxu1 %v770_v16 }
 0xb44   :  { %v746_v25 = vpop.eup %745 }
 0xb45   :  { %v369_v26 = vsel %vm851_vm4, %v744_v24, %v746_v25  ;;  %v519_v24 = vld [vmem:[%s993_s6 + $0x50] sm:$0xff]  ;;  %v518_v25 = vld [vmem:[%s993_s6 + $0x48] sm:$0xff] }
 0xb46   :  { %375 = vrot.lane.b32.xlu1 %v369_v26, %s765_s2  ;;  %v373_v30 = vmul.f32 %v371_v29, %v369_v26  ;;  %661 = vmatpush3.msra.mxu1 %v519_v24  ;;  %v514_v29 = vld [vmem:[%s993_s6 + $0x28] sm:$0xff] }
 0xb47   :  { %662 = vmatprep.subr.mxu1 %v770_v16 }
 0xb48   :  { %663 = vmatpush3.msra.mxu1 %v518_v25 }
 0xb49   :  { %664 = vmatprep.subr.mxu1 %v770_v16 }
 0xbb8   :  { %v376_v27 = vpop.permute.xlu1 %375 }
 0xbb9   :  { %v378_v28 = vmul.f32 %v376_v27, %v369_v26  ;;  %v516_v27 = vld [vmem:[%s993_s6 + $0x38] sm:$0xff] }
 0xbbb   :  { %380 = vrot.lane.b32.xlu1 %v378_v28, %s766_s3  ;;  %v515_v28 = vld [vmem:[%s993_s6 + $0x30] sm:$0xff] }
 0xc2d   :  { %v381_v31 = vpop.permute.xlu1 %380 }
 0xc2e   :  { %v383_v34 = vadd.f32 %v381_v31, %v373_v30 }
 0xc30   :  { %747 = vtanh.f32 %v383_v34  ;;  %v415_v51 = vrot.slane %v383_v34, 6  ;;  %v513_v34 = vld [vmem:[%s993_s6 + $0x20] sm:$0xff] }
 0xc3d   :  { %v748_v35 = vpop.eup %747 }
 0xc3e   :  { %386 = vrot.lane.b32.xlu0 %v748_v35, %s769_s13 }
 0xcb0   :  { %v387_v36 = vpop.permute.xlu0 %386 }
 0xcb1   :  { %v389_v37 = vmul.f32 %v387_v36, %v369_v26  ;;  %v517_v26 = vld [vmem:[%s993_s6 + $0x40] sm:$0xff]  ;;  %v512_v36 = vld [vmem:[%s993_s6 + $0x18] sm:$0xff] }
 0xcb2   :  { %665 = vmatpush3.msra.mxu1 %v517_v26 }
 0xcb3   :  { %397 = vperm.xlu0 %697, %v389_v37   ;;  %392 = vperm.xlu1 %696, %v389_v37   ;;  %v511_v37 = vld [vmem:[%s993_s6 + $0x10] sm:$0xff] }
 0xcb4   :  { %666 = vmatprep.subr.mxu1 %v770_v16 }
 0xcb5   :  { %667 = vmatpush3.msra.mxu1 %v516_v27 }
 0xcb6   :  { %668 = vmatprep.subr.mxu1 %v770_v16 }
 0xcb7   :  { %698 = vset.pattern.permute.xlu0 %v768_v33  ;;  %699 = vset.pattern.permute.xlu1 %v767_v32 }
 0xcb8   :  { %669 = vmatpush3.msra.mxu1 %v515_v28 }
 0xcb9   :  { %670 = vmatprep.subr.mxu1 %v770_v16 }
 0xcba   :  { %671 = vmatpush3.msra.mxu1 %v514_v29 }
 0xcbb   :  { %672 = vmatprep.subr.mxu1 %v770_v16 }
 0xcbc   :  { %673 = vmatpush3.msra.mxu1 %v513_v34 }
 0xcbd   :  { %674 = vmatprep.subr.mxu1 %v770_v16 }
 0xcbe   :  { %675 = vmatpush3.msra.mxu1 %v512_v36 }
 0xcbf   :  { %676 = vmatprep.subr.mxu1 %v770_v16 }
 0xcc0   :  { %677 = vmatpush3.msra.mxu1 %v511_v37 }
 0xcc1   :  { %678 = vmatprep.subr.mxu1 %v770_v16 }
 0xd2e   :  { %v398_v38 = vpop.permute.xlu0 %397  ;;  %v393_v39 = vpop.permute.xlu1 %392 }
 0xd2f   :  { %v400_v40 = vmul.f32 %v398_v38, %v839_v9  ;;  %v395_v41 = vmul.f32 %v393_v39, %v835_v8  ;;  %v510_v38 = vld [vmem:[%s993_s6 + $0x8] sm:$0xff]  ;;  %v509_v39 = vld [vmem:[%s993_s6] sm:$0xff] }
 0xd30   :  { %679 = vmatpush3.msra.mxu1 %v510_v38 }
 0xd31   :  { %v401_v42 = vadd.f32 %v400_v40, %v395_v41  ;;  %680 = vmatprep.subr.mxu1 %v770_v16  ;;  %v13_v40 = vstv %s994_s7  ;;  %v479_v41 = vld [vmem:[%s995_s4] sm:$0x3] }
 0xd32   :  { %681 = vmatpush3.msra.mxu1 %v509_v39  ;;  %14 = vst [vmem:[#allocation2] sm:$0x1] %v13_v40 }
 0xd33   :  { %v403_v43 = vrot.slane %v401_v42, 6  ;;  %v497_v42 = vrot.slane %v479_v41, %v140_v6 }
 0xd35   :  { %v405_v17 = vadd.f32 %v403_v43, %v846_v14  ;;  %v488_v43 = vrot.slane %v479_v41, %v135_v5 }
 0xd37   :  { %v621_v44 = vmul.f32 -1.442695, %v405_v17 }
 0xd39   :  { %749 = vpow2.f32 %v621_v44 }
 0xd3a   :  { %751 = vtanh.f32 %v405_v17 }
 0xd46   :  { %v750_v45 = vpop.eup %749 }
 0xd47   :  { %v409_v46 = vadd.f32 1.0, %v750_v45  ;;  %v752_v47 = vpop.eup %751 }
 0xd49   :  { %753 = vrcp.f32 %v409_v46  ;;  %v623_v46 = vld [vmem:[%s996_s5] ss:$0 sm:$0xff] }
 0xd56   :  { %v754_v33 = vpop.eup %753 }
 0xd57   :  { %v413_v48 = vsel %vm851_vm4, %v752_v47, %v754_v33 }
 0xd58   :  { %419 = vrot.lane.b32.xlu1 %v413_v48, %s765_s2  ;;  %v417_v52 = vmul.f32 %v415_v51, %v413_v48 }
 0xdca   :  { %v420_v49 = vpop.permute.xlu1 %419 }
 0xdcb   :  { %v422_v50 = vmul.f32 %v420_v49, %v413_v48 }
 0xdcd   :  { %424 = vrot.lane.b32.xlu0 %v422_v50, %s766_s3  ;;  %v624_v50 = vld [vmem:[#allocation2] ss:$0 sm:$0xff] }
 0xe3f   :  { %v425_v53 = vpop.permute.xlu0 %424 }
 0xe40   :  { %v427_v54 = vadd.f32 %v425_v53, %v417_v52 }
 0xe42   :  { %755 = vtanh.f32 %v427_v54 }
 0xe4f   :  { %v756_v55 = vpop.eup %755 }
 0xe50   :  { %430 = vrot.lane.b32.xlu1 %v756_v55, %s769_s13 }
 0xec2   :  { %v431_v56 = vpop.permute.xlu1 %430 }
 0xec3   :  { %v433_v57 = vmul.f32 %v431_v56, %v413_v48 }
 0xec5   :  { %441 = vperm.xlu1 %699, %v433_v57   ;;  %436 = vperm.xlu0 %698, %v433_v57  }
 0xf40   :  { %v442_v58 = vpop.permute.xlu1 %441  ;;  %v437_v59 = vpop.permute.xlu0 %436 }
 0xf41   :  { %v444_v60 = vmul.f32 %v442_v58, %v839_v9  ;;  %v439_v61 = vmul.f32 %v437_v59, %v835_v8  ;;  %v459_v8 = vrot.slane %v427_v54, 6 }
 0xf43   :  { %v445_v62 = vadd.f32 %v444_v60, %v439_v61 }
 0xf45   :  { %v447_v63 = vrot.slane %v445_v62, 6 }
 0xf47   :  { %v449_v0 = vadd.f32 %v447_v63, %v846_v14 }
 0xf49   :  { %v622_v1 = vmul.f32 -1.442695, %v449_v0 }
 0xf4b   :  { %757 = vpow2.f32 %v622_v1 }
 0xf4c   :  { %759 = vtanh.f32 %v449_v0 }
 0xf58   :  { %v758_v2 = vpop.eup %757 }
 0xf59   :  { %v453_v3 = vadd.f32 1.0, %v758_v2  ;;  %v760_v7 = vpop.eup %759 }
 0xf5b   :  { %761 = vrcp.f32 %v453_v3 }
 0xf68   :  { %v762_v10 = vpop.eup %761 }
 0xf69   :  { %v457_v11 = vsel %vm851_vm4, %v760_v7, %v762_v10 }
 0xf6a   :  { %463 = vrot.lane.b32.xlu1 %v457_v11, %s765_s2  ;;  %v461_v13 = vmul.f32 %v459_v8, %v457_v11 }
 0xfdc   :  { %v464_v9 = vpop.permute.xlu1 %463 }
 0xfdd   :  { %v466_v12 = vmul.f32 %v464_v9, %v457_v11 }
 0xfdf   :  { %468 = vrot.lane.b32.xlu0 %v466_v12, %s766_s3 }
0x1051   :  { %v469_v14 = vpop.permute.xlu0 %468 }
0x1052   :  { %v471_v15 = vadd.f32 %v469_v14, %v461_v13 }
0x1054   :  { %763 = vtanh.f32 %v471_v15 }
0x1061   :  { %v764_v22 = vpop.eup %763 }
0x1062   :  { %474 = vrot.lane.b32.xlu1 %v764_v22, %s769_s13 }
0x10d4   :  { %v475_v30 = vpop.permute.xlu1 %474 }
0x10d5   :  { %v477_v31 = vmul.f32 %v475_v30, %v457_v11 }
0x10d7   :  { %v478_v35 = vmax.f32 %v477_v31, 0.0 }
0x10d9   :  { %491 = vperm.xlu1 %699, %v478_v35   ;;  %482 = vperm.xlu0 %698, %v478_v35  }
0x10dd   :  { %700 = vset.pattern.permute.xlu0 %v767_v32 }
0x1154   :  { %v492_v17 = vpop.permute.xlu1 %491  ;;  %v483_v44 = vpop.permute.xlu0 %482 }
0x1155   :  { %v498_v32 = vmul.f32 %v497_v42, %v492_v17  ;;  %v489_v45 = vmul.f32 %v488_v43, %v483_v44 }
0x1157   :  { %v499_v47 = vadd.f32 %v498_v32, %v489_v45 }
0x1159   :  { %v507_v33 = vadd.f32 %v623_v46, %v499_v47 }
0x115b   :  { %v508_v48 = vmax.f32 %v507_v33, 0.0 }
0x115d   :  { %v533_v49 = vrot.slane %v508_v48, 6 }
0x115f   :  { %683 = vmatmul.mubr.f32.vlgmr.msra.gmra.mxu1 %v533_v49 }
0x121f   :  { %v601_v51 = vpop.f32.mrf.mxu1 }
0x1220   :  { %v602_v6 = vadd.f32 %v624_v50, %v601_v51 }
0x1221   :  { %v684_v52 = vpop.f32.mrf.mxu1 }
0x1222   :  { %606 = vst.msk [vmem:[%s997_s8] sm:$0x3] %vm605_vm6, %v602_v6 }

</bundles_post_ra>
